<compile_context>
chip_gen: v6e
topology: v6e:2x2x1
jax: 0.10.0
libtpu: 0.0.40
codegen_flags: <defaults>
</compile_context>

<pallas_src>
import functools

import jax
import jax.numpy as jnp
from jax.experimental import pallas as pl
from jax.experimental.pallas import tpu as pltpu


def _round_up(n, m):
    return ((n + m - 1) // m) * m


def _rnn_kernel(x_ref, w_ref, b_ref, out_ref, *, seq_len):
    """Whole RNN scan in a single grid-less kernel invocation.

    x_ref : (Sp, P)  zero-padded inputs (only the first `seq_len` rows are used)
    w_ref : (3P, P)  packed [Wx^T ; Wh^T ; Wo^T], each zero-padded to (P, P)
    b_ref : (2, P)   packed [bx + bh ; bo], zero-padded lanes
    """
    p = w_ref.shape[1]

    # Static sub-block loads from the packed weight slab ((8,128)-aligned).
    wxT = w_ref[0:p, :]
    whT = w_ref[p:2 * p, :]
    woT = w_ref[2 * p:3 * p, :]
    b = b_ref[0:1, :]
    bo = b_ref[1:2, :]

    # Hoisted input projection: one (Sp, P) @ (P, P) MXU matmul, both recurrence
    # biases folded in. Stays in vregs (exactly one vreg at Sp=8, P=128).
    xproj = jnp.dot(x_ref[...], wxT, preferred_element_type=jnp.float32) + b

    # Fully unrolled serial recurrence (seq_len is small and static here; cap
    # the unroll / switch to a bounded-unroll fori_loop if seq_len grows >~32).
    hidden = jnp.zeros((1, p), dtype=jnp.float32)
    for i in range(seq_len):
        hidden = jnp.tanh(
            jnp.dot(hidden, whT, preferred_element_type=jnp.float32)
            + xproj[i:i + 1, :]                       # static slice, in-register
        )

    logits = jnp.dot(hidden, woT, preferred_element_type=jnp.float32) + bo
    out_ref[...] = jax.nn.sigmoid(logits)


def prepare_params(params):
    """One-time packing/padding of the module parameters (hoisted off the hot path)."""
    input_size = params["wx_w"].shape[1]
    hidden_size = params["wh_w"].shape[0]
    output_size = params["wo_w"].shape[0]

    # One common lane-dense padding so hidden / x / logits all share a lane width.
    p = max(_round_up(input_size, 128),
            _round_up(hidden_size, 128),
            _round_up(output_size, 128))

    def pad2(a, r, c):
        a = a.astype(jnp.float32)
        return jnp.pad(a, ((0, r - a.shape[0]), (0, c - a.shape[1])))

    wxT = pad2(params["wx_w"].T, p, p)                               # (P, P)
    whT = pad2(params["wh_w"].T, p, p)                               # (P, P)
    woT = pad2(params["wo_w"].T, p, p)                               # (P, P)
    w_slab = jnp.concatenate([wxT, whT, woT], axis=0)                # (3P, P)

    b = pad2((params["wh_b"] + params["wx_b"]).reshape(1, -1), 1, p)  # (1, P)
    bo = pad2(params["wo_b"].reshape(1, -1), 1, p)                    # (1, P)
    b_slab = jnp.concatenate([b, bo], axis=0)                         # (2, P)

    return {
        "w_slab": w_slab,
        "b_slab": b_slab,
        "pad": p,
        "input_size": input_size,
        "output_size": output_size,
    }


def my_rnn_forward(x, prep):
    """x: (seq_len, input_size) f32; prep: output of prepare_params()."""
    seq_len, input_size = x.shape
    p = prep["pad"]
    sp = _round_up(seq_len, 8)  # sublane-aligned rows for the xproj matmul

    # Per-call work is only: pad x, run the kernel, slice the output.
    x_p = jnp.pad(x.astype(jnp.float32),
                  ((0, sp - seq_len), (0, p - input_size)))           # (Sp, P)

    vmem = pl.BlockSpec(memory_space=pltpu.MemorySpace.VMEM)
    out_p = pl.pallas_call(
        functools.partial(_rnn_kernel, seq_len=seq_len),
        out_shape=jax.ShapeDtypeStruct((1, p), jnp.float32),
        in_specs=[vmem, vmem, vmem],
        out_specs=vmem,
    )(x_p, prep["w_slab"], prep["b_slab"])

    return out_p[:, :prep["output_size"]]


def _init_params(key, input_size, hidden_size, output_size):
    """Deterministic init mimicking torch.nn.Linear default U[-1/sqrt(fan_in), ...]."""
    ks = jax.random.split(key, 6)

    def lin(kw, kb, fan_in, fan_out):
        bound = 1.0 / jnp.sqrt(float(fan_in))
        w = jax.random.uniform(kw, (fan_out, fan_in), jnp.float32, -bound, bound)
        b = jax.random.uniform(kb, (fan_out,), jnp.float32, -bound, bound)
        return w, b

    wh_w, wh_b = lin(ks[0], ks[1], hidden_size, hidden_size)
    wx_w, wx_b = lin(ks[2], ks[3], input_size, hidden_size)
    wo_w, wo_b = lin(ks[4], ks[5], hidden_size, output_size)
    return {
        "wh_w": wh_w, "wh_b": wh_b,
        "wx_w": wx_w, "wx_b": wx_b,
        "wo_w": wo_w, "wo_b": wo_b,
    }


def _reference_forward(x, params):
    """Pure-JAX reference replicating the PyTorch loop exactly."""
    hidden = jnp.zeros((1, params["wh_w"].shape[0]), jnp.float32)
    for i in range(x.shape[0]):
        hidden = jnp.tanh(
            hidden @ params["wh_w"].T + params["wh_b"]
            + x[i][None, :] @ params["wx_w"].T + params["wx_b"]
        )
    output = hidden @ params["wo_w"].T + params["wo_b"]
    return jax.nn.sigmoid(output)


if __name__ == "__main__":
    seq_len, input_size, hidden_size, output_size = 8, 16, 32, 4

    key = jax.random.PRNGKey(0)
    k_x, k_p = jax.random.split(key)
    x = jax.random.normal(k_x, (seq_len, input_size), dtype=jnp.float32)
    params = _init_params(k_p, input_size, hidden_size, output_size)

    prep = prepare_params(params)          # one-time weight packing/padding
    out = my_rnn_forward(x, prep)
    out = jax.block_until_ready(out)

    ref = _reference_forward(x, params)
    assert out.shape == (1, output_size), out.shape
    assert jnp.allclose(out, ref, atol=1e-5, rtol=1e-5), (out, ref)

    print("KERNEL_OK")
</pallas_src>

<mosaic_0001>
module attributes {stable_mosaic.version = 11 : i64} {
  func.func @_rnn_kernel(%arg0: memref<8x128xf32, #tpu.memory_space<vmem>>, %arg1: memref<384x128xf32, #tpu.memory_space<vmem>>, %arg2: memref<2x128xf32, #tpu.memory_space<vmem>>, %arg3: memref<1x128xf32, #tpu.memory_space<vmem>>) attributes {dimension_semantics = [], scalar_prefetch = 0 : i64, scratch_operands = 0 : i64, tpu.core_type = #tpu.core_type<tc>} {
    %c0 = arith.constant 0 : index
    %c0_0 = arith.constant 0 : index
    %0 = vector.load %arg1[%c0, %c0_0] : memref<384x128xf32, #tpu.memory_space<vmem>>, vector<128x128xf32>
    %c128 = arith.constant 128 : index
    %c0_1 = arith.constant 0 : index
    %1 = vector.load %arg1[%c128, %c0_1] : memref<384x128xf32, #tpu.memory_space<vmem>>, vector<128x128xf32>
    %c256 = arith.constant 256 : index
    %c0_2 = arith.constant 0 : index
    %2 = vector.load %arg1[%c256, %c0_2] : memref<384x128xf32, #tpu.memory_space<vmem>>, vector<128x128xf32>
    %c0_3 = arith.constant 0 : index
    %c0_4 = arith.constant 0 : index
    %3 = vector.load %arg2[%c0_3, %c0_4] : memref<2x128xf32, #tpu.memory_space<vmem>>, vector<1x128xf32>
    %c1 = arith.constant 1 : index
    %c0_5 = arith.constant 0 : index
    %4 = vector.load %arg2[%c1, %c0_5] : memref<2x128xf32, #tpu.memory_space<vmem>>, vector<1x128xf32>
    %c0_6 = arith.constant 0 : index
    %c0_7 = arith.constant 0 : index
    %5 = vector.load %arg0[%c0_6, %c0_7] : memref<8x128xf32, #tpu.memory_space<vmem>>, vector<8x128xf32>
    %cst = arith.constant dense<0.000000e+00> : vector<8x128xf32>
    %6 = tpu.matmul %5, %0, %cst {dimension_numbers = #tpu.dot_dimension_numbers<[1], [0], [0], [1], [0, 0, 1, 1], [], []>} : vector<8x128xf32>, vector<128x128xf32>, vector<8x128xf32> -> vector<8x128xf32>
    %7 = vector.broadcast %3 : vector<1x128xf32> to vector<8x128xf32>
    %8 = arith.addf %6, %7 : vector<8x128xf32>
    %cst_8 = arith.constant 0.000000e+00 : f32
    %9 = vector.broadcast %cst_8 : f32 to vector<1x128xf32>
    %cst_9 = arith.constant dense<0.000000e+00> : vector<1x128xf32>
    %10 = tpu.matmul %9, %1, %cst_9 {dimension_numbers = #tpu.dot_dimension_numbers<[1], [0], [0], [1], [0, 0, 1, 1], [], []>} : vector<1x128xf32>, vector<128x128xf32>, vector<1x128xf32> -> vector<1x128xf32>
    %11 = vector.extract_strided_slice %8 {offsets = [0, 0], sizes = [1, 128], strides = [1, 1]} : vector<8x128xf32> to vector<1x128xf32>
    %12 = arith.addf %10, %11 : vector<1x128xf32>
    %13 = math.tanh %12 : vector<1x128xf32>
    %cst_10 = arith.constant dense<0.000000e+00> : vector<1x128xf32>
    %14 = tpu.matmul %13, %1, %cst_10 {dimension_numbers = #tpu.dot_dimension_numbers<[1], [0], [0], [1], [0, 0, 1, 1], [], []>} : vector<1x128xf32>, vector<128x128xf32>, vector<1x128xf32> -> vector<1x128xf32>
    %15 = vector.extract_strided_slice %8 {offsets = [1, 0], sizes = [1, 128], strides = [1, 1]} : vector<8x128xf32> to vector<1x128xf32>
    %16 = arith.addf %14, %15 : vector<1x128xf32>
    %17 = math.tanh %16 : vector<1x128xf32>
    %cst_11 = arith.constant dense<0.000000e+00> : vector<1x128xf32>
    %18 = tpu.matmul %17, %1, %cst_11 {dimension_numbers = #tpu.dot_dimension_numbers<[1], [0], [0], [1], [0, 0, 1, 1], [], []>} : vector<1x128xf32>, vector<128x128xf32>, vector<1x128xf32> -> vector<1x128xf32>
    %19 = vector.extract_strided_slice %8 {offsets = [2, 0], sizes = [1, 128], strides = [1, 1]} : vector<8x128xf32> to vector<1x128xf32>
    %20 = arith.addf %18, %19 : vector<1x128xf32>
    %21 = math.tanh %20 : vector<1x128xf32>
    %cst_12 = arith.constant dense<0.000000e+00> : vector<1x128xf32>
    %22 = tpu.matmul %21, %1, %cst_12 {dimension_numbers = #tpu.dot_dimension_numbers<[1], [0], [0], [1], [0, 0, 1, 1], [], []>} : vector<1x128xf32>, vector<128x128xf32>, vector<1x128xf32> -> vector<1x128xf32>
    %23 = vector.extract_strided_slice %8 {offsets = [3, 0], sizes = [1, 128], strides = [1, 1]} : vector<8x128xf32> to vector<1x128xf32>
    %24 = arith.addf %22, %23 : vector<1x128xf32>
    %25 = math.tanh %24 : vector<1x128xf32>
    %cst_13 = arith.constant dense<0.000000e+00> : vector<1x128xf32>
    %26 = tpu.matmul %25, %1, %cst_13 {dimension_numbers = #tpu.dot_dimension_numbers<[1], [0], [0], [1], [0, 0, 1, 1], [], []>} : vector<1x128xf32>, vector<128x128xf32>, vector<1x128xf32> -> vector<1x128xf32>
    %27 = vector.extract_strided_slice %8 {offsets = [4, 0], sizes = [1, 128], strides = [1, 1]} : vector<8x128xf32> to vector<1x128xf32>
    %28 = arith.addf %26, %27 : vector<1x128xf32>
    %29 = math.tanh %28 : vector<1x128xf32>
    %cst_14 = arith.constant dense<0.000000e+00> : vector<1x128xf32>
    %30 = tpu.matmul %29, %1, %cst_14 {dimension_numbers = #tpu.dot_dimension_numbers<[1], [0], [0], [1], [0, 0, 1, 1], [], []>} : vector<1x128xf32>, vector<128x128xf32>, vector<1x128xf32> -> vector<1x128xf32>
    %31 = vector.extract_strided_slice %8 {offsets = [5, 0], sizes = [1, 128], strides = [1, 1]} : vector<8x128xf32> to vector<1x128xf32>
    %32 = arith.addf %30, %31 : vector<1x128xf32>
    %33 = math.tanh %32 : vector<1x128xf32>
    %cst_15 = arith.constant dense<0.000000e+00> : vector<1x128xf32>
    %34 = tpu.matmul %33, %1, %cst_15 {dimension_numbers = #tpu.dot_dimension_numbers<[1], [0], [0], [1], [0, 0, 1, 1], [], []>} : vector<1x128xf32>, vector<128x128xf32>, vector<1x128xf32> -> vector<1x128xf32>
    %35 = vector.extract_strided_slice %8 {offsets = [6, 0], sizes = [1, 128], strides = [1, 1]} : vector<8x128xf32> to vector<1x128xf32>
    %36 = arith.addf %34, %35 : vector<1x128xf32>
    %37 = math.tanh %36 : vector<1x128xf32>
    %cst_16 = arith.constant dense<0.000000e+00> : vector<1x128xf32>
    %38 = tpu.matmul %37, %1, %cst_16 {dimension_numbers = #tpu.dot_dimension_numbers<[1], [0], [0], [1], [0, 0, 1, 1], [], []>} : vector<1x128xf32>, vector<128x128xf32>, vector<1x128xf32> -> vector<1x128xf32>
    %39 = vector.extract_strided_slice %8 {offsets = [7, 0], sizes = [1, 128], strides = [1, 1]} : vector<8x128xf32> to vector<1x128xf32>
    %40 = arith.addf %38, %39 : vector<1x128xf32>
    %41 = math.tanh %40 : vector<1x128xf32>
    %cst_17 = arith.constant dense<0.000000e+00> : vector<1x128xf32>
    %42 = tpu.matmul %41, %2, %cst_17 {dimension_numbers = #tpu.dot_dimension_numbers<[1], [0], [0], [1], [0, 0, 1, 1], [], []>} : vector<1x128xf32>, vector<128x128xf32>, vector<1x128xf32> -> vector<1x128xf32>
    %43 = arith.addf %42, %4 : vector<1x128xf32>
    %44 = arith.negf %43 : vector<1x128xf32>
    %45 = math.exp %44 : vector<1x128xf32>
    %cst_18 = arith.constant 1.000000e+00 : f32
    %46 = vector.broadcast %cst_18 : f32 to vector<1x128xf32>
    %47 = arith.addf %46, %45 : vector<1x128xf32>
    %48 = arith.divf %46, %47 : vector<1x128xf32>
    %c0_19 = arith.constant 0 : index
    %c0_20 = arith.constant 0 : index
    %49 = vector.load %arg3[%c0_19, %c0_20] : memref<1x128xf32, #tpu.memory_space<vmem>>, vector<1x128xf32>
    tpu.vector_store %arg3[%c0_19, %c0_20], %48 {strides = array<i32>} : memref<1x128xf32, #tpu.memory_space<vmem>>, vector<1x128xf32>,
    return
  }
}

</mosaic_0001>

<bundles_post_ra>
// kernel: tpu_custom_call.1
= control target key start
LH: loop header
LB: loop body
LE: loop exit
PB: predicated region body
PF: predicated region fallthrough
CT: control target
= control target key end

     0   :  { %8 = vsyncpa [#allocation3], 0  ;;  %s1850_s0 = inlined_call_operand.hbm [shape: f32[8,128], index: 0, kind: input, shape index: {}]   ;;  %s1851_s1 = inlined_call_operand.hbm [shape: f32[384,128], index: 1, kind: input, shape index: {}]   ;;  %s1852_s2 = inlined_call_operand.vmem [shape: f32[2,128], index: 2, kind: input, shape index: {}]   ;;  %s1853_s3 = inlined_call_operand.hbm [shape: f32[1,128], index: 3, kind: output, shape index: {}]  }
   0x1   :  { %9 = vsyncpa [#allocation6], 0 }
   0x2   :  { %10 = vsyncpa [#allocation4], 0  ;;  %s1457_s12 = smov [#allocation2]   ;;  %s1458_s14 = smov [#allocation5]  }
   0x3   :  { %s17_s13 = sshll.u32 %s1457_s12, 4  ;;  %s26_s15 = sshll.u32 %s1458_s14, 4  ;;  %s18_s13 = int_to_ptr.vmem [resolvable:$true] %s17_s13  ;;  %s27_s15 = int_to_ptr.vmem [resolvable:$true] %s26_s15 }
   0x4   :  { %s1399_s16 = scalar_lea.vmem %s18_s13, 128  ;;  %p1404_p1 = scmp.lt.s32.totalorder %s18_s13, %s18_s13 }
   0x5   :  { %p1400_p0 = scmp.ne.s32.totalorder %s18_s13, %s1399_s16  ;;  %p1405_p2 = scmp.lt.s32.totalorder %s1399_s16, %s1399_s16 }
   0x7   :  { %p1406_p3 = por %p1405_p2, %p1404_p1 }
   0x9   :  { %p1407_p4 = pnand %p1406_p3, %p1400_p0 }
   0xb   :  { %1410 = shalt.err (!%p1407_p4)
}
   0xc   :  { %20 = dma.hbm_to_vmem [thread:$0]  %s1850_s0, 128, %s18_s13, [#allocation3]  }
   0xd   :  { %s1419_s19 = scalar_lea.vmem %s27_s15, 6144  ;;  %p1424_p6 = scmp.lt.s32.totalorder %s27_s15, %s27_s15 }
   0xe   :  { %p1420_p5 = scmp.ne.s32.totalorder %s27_s15, %s1419_s19  ;;  %p1425_p7 = scmp.lt.s32.totalorder %s1419_s19, %s1419_s19 }
  0x10   :  { %p1426_p8 = por %p1425_p7, %p1424_p6 }
  0x12   :  { %p1427_p9 = pnand %p1426_p8, %p1420_p5 }
  0x14   :  { %1430 = shalt.err (!%p1427_p9)
}
  0x15   :  { %s1459_s20 = smov 128   ;;  %s1460_s21 = smov 8  }
  0x16   :  { %32 = dma.hbm_to_vmem [thread:$0]  %s1851_s1, 6144, %s27_s15, [#allocation6], %s1459_s20, %s1459_s20, %s1460_s21  }
  0x17   :  { %1451 = dma.done.wait [#allocation3], 128  }
  0x18   :  { %1452 = vsyncadd [#allocation3], 4294967168 }
  0x19   :  { %1453 = dma.done.wait [#allocation6], 6144  }
  0x1a   :  { %1454 = vsyncadd [#allocation6], 4294961152  ;;  %v1461_v0 = vmov 0.0   ;;  %vm1462_vm0 = vmmov 0   ;;  %v56_v1 = vld [vmem:[#allocation5 + $0x78] sm:$0xff]  ;;  %v55_v3 = vld [vmem:[#allocation5 + $0x70] sm:$0xff] }
  0x1b   :  { %1014 = vmatprep.subr.mxu0 %v1461_v0  ;;  %1049 = vmatprep.subr.mxu1 %v1461_v0  ;;  %v1496_v2 = vld [vmem:[#allocation5 + $0xf8] sm:$0xff]  ;;  %v1499_v4 = vld [vmem:[#allocation5 + $0xf0] sm:$0xff]  ;;  %v54_v5 = vld [vmem:[#allocation5 + $0x68] sm:$0xff]  ;;  %s1463_s26 = smov [#allocation7]  }
  0x1c   :  { %1046 = vmatprep.mubr.msk.f32.mxu0 %vm1462_vm0, %v1461_v0  ;;  %1081 = vmatprep.mubr.msk.f32.mxu1 %vm1462_vm0, %v1461_v0  ;;  %v1503_v6 = vld [vmem:[#allocation5 + $0xe8] sm:$0xff]  ;;  %v53_v7 = vld [vmem:[#allocation5 + $0x60] sm:$0xff]  ;;  %v52_v9 = vld [vmem:[#allocation5 + $0x58] sm:$0xff]  ;;  %s832_s27 = sshll.u32 %s1463_s26, 4  ;;  %s833_s27 = int_to_ptr.vmem [resolvable:$true] %s832_s27 }
  0x1d   :  { %1015 = vmatpush3.msra.mxu0 %v56_v1  ;;  %1050 = vmatpush3.msra.mxu1 %v1496_v2  ;;  %v1508_v8 = vld [vmem:[#allocation5 + $0xe0] sm:$0xff]  ;;  %v1513_v10 = vld [vmem:[#allocation5 + $0xd8] sm:$0xff]  ;;  %v51_v11 = vld [vmem:[#allocation5 + $0x50] sm:$0xff]  ;;  %s1431_s28 = scalar_lea.vmem %s833_s27, 16  ;;  %s1435_s29 = scalar_lea.vmem %s833_s27, 32 }
  0x1e   :  { %1016 = vmatprep.subr.mxu0 %v1461_v0  ;;  %1051 = vmatprep.subr.mxu1 %v1461_v0  ;;  %v1518_v12 = vld [vmem:[#allocation5 + $0xd0] sm:$0xff]  ;;  %v50_v13 = vld [vmem:[#allocation5 + $0x48] sm:$0xff]  ;;  %v49_v15 = vld [vmem:[#allocation5 + $0x40] sm:$0xff]  ;;  %p1432_p10 = scmp.ne.s32.totalorder %s833_s27, %s1431_s28  ;;  %p1436_p11 = scmp.lt.s32.totalorder %s833_s27, %s833_s27 }
  0x1f   :  { %1017 = vmatpush3.msra.mxu0 %v55_v3  ;;  %1052 = vmatpush3.msra.mxu1 %v1499_v4  ;;  %v1523_v14 = vld [vmem:[#allocation5 + $0xc8] sm:$0xff]  ;;  %v1528_v16 = vld [vmem:[#allocation5 + $0xc0] sm:$0xff]  ;;  %v48_v17 = vld [vmem:[#allocation5 + $0x38] sm:$0xff]  ;;  %p1437_p12 = scmp.lt.s32.totalorder %s1435_s29, %s1431_s28 }
  0x20   :  { %1018 = vmatprep.subr.mxu0 %v1461_v0  ;;  %1053 = vmatprep.subr.mxu1 %v1461_v0  ;;  %v1533_v18 = vld [vmem:[#allocation5 + $0xb8] sm:$0xff]  ;;  %v47_v19 = vld [vmem:[#allocation5 + $0x30] sm:$0xff]  ;;  %v46_v21 = vld [vmem:[#allocation5 + $0x28] sm:$0xff] }
  0x21   :  { %1019 = vmatpush3.msra.mxu0 %v54_v5  ;;  %1054 = vmatpush3.msra.mxu1 %v1503_v6  ;;  %v1538_v20 = vld [vmem:[#allocation5 + $0xb0] sm:$0xff]  ;;  %v1543_v22 = vld [vmem:[#allocation5 + $0xa8] sm:$0xff]  ;;  %v45_v23 = vld [vmem:[#allocation5 + $0x20] sm:$0xff]  ;;  %p1438_p13 = por %p1437_p12, %p1436_p11 }
  0x22   :  { %1020 = vmatprep.subr.mxu0 %v1461_v0  ;;  %1055 = vmatprep.subr.mxu1 %v1461_v0  ;;  %v1548_v24 = vld [vmem:[#allocation5 + $0xa0] sm:$0xff]  ;;  %v44_v25 = vld [vmem:[#allocation5 + $0x18] sm:$0xff]  ;;  %v43_v27 = vld [vmem:[#allocation5 + $0x10] sm:$0xff] }
  0x23   :  { %1021 = vmatpush3.msra.mxu0 %v53_v7  ;;  %1056 = vmatpush3.msra.mxu1 %v1508_v8  ;;  %v1553_v26 = vld [vmem:[#allocation5 + $0x98] sm:$0xff]  ;;  %v1558_v28 = vld [vmem:[#allocation5 + $0x90] sm:$0xff]  ;;  %v42_v29 = vld [vmem:[#allocation5 + $0x8] sm:$0xff]  ;;  %p1439_p0 = pnand %p1438_p13, %p1432_p10 }
  0x24   :  { %1022 = vmatprep.subr.mxu0 %v1461_v0  ;;  %1057 = vmatprep.subr.mxu1 %v1461_v0  ;;  %v1563_v30 = vld [vmem:[#allocation5 + $0x88] sm:$0xff]  ;;  %v41_v31 = vld [vmem:[#allocation5] sm:$0xff]  ;;  %v91_v33 = vld [vmem:[#allocation2] sm:$0xff] }
  0x25   :  { %1023 = vmatpush3.msra.mxu0 %v52_v9  ;;  %1058 = vmatpush3.msra.mxu1 %v1513_v10  ;;  %v1568_v32 = vld [vmem:[#allocation5 + $0x80] sm:$0xff]  ;;  %v842_v34 = vld [vmem:[%s1852_s2] ss:$0 sm:$0xff]  ;;  %v87_v5 = vld [vmem:[#allocation5 + $0x170] sm:$0xff] }
  0x26   :  { %1024 = vmatprep.subr.mxu0 %v1461_v0  ;;  %1059 = vmatprep.subr.mxu1 %v1461_v0  ;;  %v85_v7 = vld [vmem:[#allocation5 + $0x160] sm:$0xff]  ;;  %v83_v9 = vld [vmem:[#allocation5 + $0x150] sm:$0xff] }
  0x27   :  { %1025 = vmatpush3.msra.mxu0 %v51_v11  ;;  %1060 = vmatpush3.msra.mxu1 %v1518_v12 }
  0x28   :  { %1026 = vmatprep.subr.mxu0 %v1461_v0  ;;  %1061 = vmatprep.subr.mxu1 %v1461_v0 }
  0x29   :  { %1027 = vmatpush3.msra.mxu0 %v50_v13  ;;  %1062 = vmatpush3.msra.mxu1 %v1523_v14 }
  0x2a   :  { %1028 = vmatprep.subr.mxu0 %v1461_v0  ;;  %1063 = vmatprep.subr.mxu1 %v1461_v0 }
  0x2b   :  { %1029 = vmatpush3.msra.mxu0 %v49_v15  ;;  %1064 = vmatpush3.msra.mxu1 %v1528_v16 }
  0x2c   :  { %1030 = vmatprep.subr.mxu0 %v1461_v0  ;;  %1065 = vmatprep.subr.mxu1 %v1461_v0 }
  0x2d   :  { %1031 = vmatpush3.msra.mxu0 %v48_v17  ;;  %1066 = vmatpush3.msra.mxu1 %v1533_v18  ;;  %v80_v17 = vld [vmem:[#allocation5 + $0x138] sm:$0xff] }
  0x2e   :  { %1032 = vmatprep.subr.mxu0 %v1461_v0  ;;  %1067 = vmatprep.subr.mxu1 %v1461_v0 }
  0x2f   :  { %1033 = vmatpush3.msra.mxu0 %v47_v19  ;;  %1068 = vmatpush3.msra.mxu1 %v1538_v20  ;;  %v78_v19 = vld [vmem:[#allocation5 + $0x128] sm:$0xff] }
  0x30   :  { %1034 = vmatprep.subr.mxu0 %v1461_v0  ;;  %1069 = vmatprep.subr.mxu1 %v1461_v0 }
  0x31   :  { %1035 = vmatpush3.msra.mxu0 %v46_v21  ;;  %1070 = vmatpush3.msra.mxu1 %v1543_v22  ;;  %v76_v21 = vld [vmem:[#allocation5 + $0x118] sm:$0xff] }
  0x32   :  { %1036 = vmatprep.subr.mxu0 %v1461_v0  ;;  %1071 = vmatprep.subr.mxu1 %v1461_v0 }
  0x33   :  { %1037 = vmatpush3.msra.mxu0 %v45_v23  ;;  %1072 = vmatpush3.msra.mxu1 %v1548_v24  ;;  %v74_v23 = vld [vmem:[#allocation5 + $0x108] sm:$0xff] }
  0x34   :  { %1038 = vmatprep.subr.mxu0 %v1461_v0  ;;  %1073 = vmatprep.subr.mxu1 %v1461_v0 }
  0x35   :  { %1039 = vmatpush3.msra.mxu0 %v44_v25  ;;  %1074 = vmatpush3.msra.mxu1 %v1553_v26 }
  0x36   :  { %1040 = vmatprep.subr.mxu0 %v1461_v0  ;;  %1075 = vmatprep.subr.mxu1 %v1461_v0 }
  0x37   :  { %1041 = vmatpush3.msra.mxu0 %v43_v27  ;;  %1076 = vmatpush3.msra.mxu1 %v1558_v28 }
  0x38   :  { %1042 = vmatprep.subr.mxu0 %v1461_v0  ;;  %1077 = vmatprep.subr.mxu1 %v1461_v0 }
  0x39   :  { %1043 = vmatpush3.msra.mxu0 %v42_v29  ;;  %1078 = vmatpush3.msra.mxu1 %v1563_v30 }
  0x3a   :  { %1044 = vmatprep.subr.mxu0 %v1461_v0  ;;  %1079 = vmatprep.subr.mxu1 %v1461_v0 }
  0x3b   :  { %1045 = vmatpush3.msra.mxu0 %v41_v31  ;;  %1080 = vmatpush3.msra.mxu1 %v1568_v32 }
  0x3c   :  { %1047 = vmatmul.mubr.f32.vlgmr.msra.gmra.mxu0 %v91_v33  ;;  %1082 = vmatmul.mubr.f32.vlgmr.msra.gmra.mxu1 %v1461_v0 }
  0x3d   :  { %1084 = vmatprep.subr.mxu0 %v1461_v0  ;;  %1116 = vmatprep.mubr.msk.f32.mxu0 %vm1462_vm0, %v1461_v0 }
  0x3e   :  { %1085 = vmatpush3.msra.mxu0 %v1496_v2  ;;  %1119 = vmatprep.subr.mxu1 %v1461_v0 }
  0x3f   :  { %1086 = vmatprep.subr.mxu0 %v1461_v0  ;;  %1120 = vmatpush3.msra.mxu1 %v1496_v2 }
  0x40   :  { %1087 = vmatpush3.msra.mxu0 %v1499_v4  ;;  %1121 = vmatprep.subr.mxu1 %v1461_v0 }
  0x41   :  { %1088 = vmatprep.subr.mxu0 %v1461_v0  ;;  %1122 = vmatpush3.msra.mxu1 %v1499_v4 }
  0x42   :  { %1089 = vmatpush3.msra.mxu0 %v1503_v6  ;;  %1123 = vmatprep.subr.mxu1 %v1461_v0 }
  0x43   :  { %1090 = vmatprep.subr.mxu0 %v1461_v0  ;;  %1124 = vmatpush3.msra.mxu1 %v1503_v6 }
  0x44   :  { %1091 = vmatpush3.msra.mxu0 %v1508_v8  ;;  %1125 = vmatprep.subr.mxu1 %v1461_v0 }
  0x45   :  { %1092 = vmatprep.subr.mxu0 %v1461_v0  ;;  %1126 = vmatpush3.msra.mxu1 %v1508_v8 }
  0x46   :  { %1093 = vmatpush3.msra.mxu0 %v1513_v10  ;;  %1127 = vmatprep.subr.mxu1 %v1461_v0 }
  0x47   :  { %1094 = vmatprep.subr.mxu0 %v1461_v0  ;;  %1128 = vmatpush3.msra.mxu1 %v1513_v10 }
  0x48   :  { %1095 = vmatpush3.msra.mxu0 %v1518_v12  ;;  %1129 = vmatprep.subr.mxu1 %v1461_v0 }
  0x49   :  { %1096 = vmatprep.subr.mxu0 %v1461_v0  ;;  %1130 = vmatpush3.msra.mxu1 %v1518_v12 }
  0x4a   :  { %1097 = vmatpush3.msra.mxu0 %v1523_v14  ;;  %1131 = vmatprep.subr.mxu1 %v1461_v0 }
  0x4b   :  { %1098 = vmatprep.subr.mxu0 %v1461_v0  ;;  %1132 = vmatpush3.msra.mxu1 %v1523_v14 }
  0x4c   :  { %1099 = vmatpush3.msra.mxu0 %v1528_v16  ;;  %1133 = vmatprep.subr.mxu1 %v1461_v0 }
  0x4d   :  { %1100 = vmatprep.subr.mxu0 %v1461_v0  ;;  %1134 = vmatpush3.msra.mxu1 %v1528_v16 }
  0x4e   :  { %1101 = vmatpush3.msra.mxu0 %v1533_v18  ;;  %1135 = vmatprep.subr.mxu1 %v1461_v0 }
  0x4f   :  { %1102 = vmatprep.subr.mxu0 %v1461_v0  ;;  %1136 = vmatpush3.msra.mxu1 %v1533_v18 }
  0x50   :  { %1103 = vmatpush3.msra.mxu0 %v1538_v20  ;;  %1137 = vmatprep.subr.mxu1 %v1461_v0 }
  0x51   :  { %1104 = vmatprep.subr.mxu0 %v1461_v0  ;;  %1138 = vmatpush3.msra.mxu1 %v1538_v20 }
  0x52   :  { %1105 = vmatpush3.msra.mxu0 %v1543_v22  ;;  %1139 = vmatprep.subr.mxu1 %v1461_v0 }
  0x53   :  { %1106 = vmatprep.subr.mxu0 %v1461_v0  ;;  %1140 = vmatpush3.msra.mxu1 %v1543_v22 }
  0x54   :  { %1107 = vmatpush3.msra.mxu0 %v1548_v24  ;;  %1141 = vmatprep.subr.mxu1 %v1461_v0 }
  0x55   :  { %1108 = vmatprep.subr.mxu0 %v1461_v0  ;;  %1142 = vmatpush3.msra.mxu1 %v1548_v24 }
  0x56   :  { %1109 = vmatpush3.msra.mxu0 %v1553_v26  ;;  %1143 = vmatprep.subr.mxu1 %v1461_v0 }
  0x57   :  { %1110 = vmatprep.subr.mxu0 %v1461_v0  ;;  %1144 = vmatpush3.msra.mxu1 %v1553_v26 }
  0x58   :  { %1111 = vmatpush3.msra.mxu0 %v1558_v28  ;;  %1145 = vmatprep.subr.mxu1 %v1461_v0 }
  0x59   :  { %1112 = vmatprep.subr.mxu0 %v1461_v0  ;;  %1146 = vmatpush3.msra.mxu1 %v1558_v28 }
  0x5a   :  { %1113 = vmatpush3.msra.mxu0 %v1563_v30  ;;  %1147 = vmatprep.subr.mxu1 %v1461_v0 }
  0x5b   :  { %1114 = vmatprep.subr.mxu0 %v1461_v0  ;;  %1148 = vmatpush3.msra.mxu1 %v1563_v30 }
  0x5c   :  { %1115 = vmatpush3.msra.mxu0 %v1568_v32  ;;  %1149 = vmatprep.subr.mxu1 %v1461_v0 }
  0x5d   :  { %1150 = vmatpush3.msra.mxu1 %v1568_v32  ;;  %1151 = vmatprep.mubr.msk.f32.mxu1 %vm1462_vm0, %v1461_v0 }
  0x5e   :  { %1154 = vmatprep.subr.mxu0 %v1461_v0  ;;  %1189 = vmatprep.subr.mxu1 %v1461_v0 }
  0xfc   :  { %v162_v35 = vpop.f32.mrf.mxu0  ;;  %v232_v36 = vpop.f32.mrf.mxu1 }
  0xfd   :  { %v1648_v37 = vadd.f32 %v842_v34, %v162_v35 }
  0xfe   :  { %v1048_v38 = vpop.f32.mrf.mxu0  ;;  %v1083_v39 = vpop.f32.mrf.mxu1 }
  0xff   :  { %v233_v40 = vadd.f32 %v232_v36, %v1648_v37  ;;  %v238_v42 = vrot.slane %v1648_v37, 1  ;;  %v311_v47 = vrot.slane %v1648_v37, 2  ;;  %v384_v52 = vrot.slane %v1648_v37, 3 }
 0x100   :  { %v457_v57 = vrot.slane %v1648_v37, 4  ;;  %v530_v62 = vrot.slane %v1648_v37, 5  ;;  %v603_v11 = vrot.slane %v1648_v37, 6  ;;  %v676_v25 = vrot.slane %v1648_v37, 7 }
 0x101   :  { %1371 = vtanh.f32 %v233_v40 }
 0x10e   :  { %v1372_v41 = vpop.eup %1371 }
 0x10f   :  { %1117 = vmatmul.mubr.f32.vlgmr.msra.gmra.mxu0 %v1372_v41 }
 0x110   :  { %1155 = vmatpush3.msra.mxu0 %v1496_v2  ;;  %1186 = vmatprep.mubr.msk.f32.mxu0 %vm1462_vm0, %v1461_v0 }
 0x111   :  { %1156 = vmatprep.subr.mxu0 %v1461_v0 }
 0x112   :  { %1157 = vmatpush3.msra.mxu0 %v1499_v4 }
 0x113   :  { %1158 = vmatprep.subr.mxu0 %v1461_v0 }
 0x114   :  { %1159 = vmatpush3.msra.mxu0 %v1503_v6 }
 0x115   :  { %1160 = vmatprep.subr.mxu0 %v1461_v0 }
 0x116   :  { %1161 = vmatpush3.msra.mxu0 %v1508_v8 }
 0x117   :  { %1162 = vmatprep.subr.mxu0 %v1461_v0 }
 0x118   :  { %1163 = vmatpush3.msra.mxu0 %v1513_v10 }
 0x119   :  { %1164 = vmatprep.subr.mxu0 %v1461_v0 }
 0x11a   :  { %1165 = vmatpush3.msra.mxu0 %v1518_v12 }
 0x11b   :  { %1166 = vmatprep.subr.mxu0 %v1461_v0 }
 0x11c   :  { %1167 = vmatpush3.msra.mxu0 %v1523_v14 }
 0x11d   :  { %1168 = vmatprep.subr.mxu0 %v1461_v0 }
 0x11e   :  { %1169 = vmatpush3.msra.mxu0 %v1528_v16 }
 0x11f   :  { %1170 = vmatprep.subr.mxu0 %v1461_v0 }
 0x120   :  { %1171 = vmatpush3.msra.mxu0 %v1533_v18 }
 0x121   :  { %1172 = vmatprep.subr.mxu0 %v1461_v0 }
 0x122   :  { %1173 = vmatpush3.msra.mxu0 %v1538_v20 }
 0x123   :  { %1174 = vmatprep.subr.mxu0 %v1461_v0 }
 0x124   :  { %1175 = vmatpush3.msra.mxu0 %v1543_v22 }
 0x125   :  { %1176 = vmatprep.subr.mxu0 %v1461_v0 }
 0x126   :  { %1177 = vmatpush3.msra.mxu0 %v1548_v24 }
 0x127   :  { %1178 = vmatprep.subr.mxu0 %v1461_v0 }
 0x128   :  { %1179 = vmatpush3.msra.mxu0 %v1553_v26 }
 0x129   :  { %1180 = vmatprep.subr.mxu0 %v1461_v0 }
 0x12a   :  { %1181 = vmatpush3.msra.mxu0 %v1558_v28 }
 0x12b   :  { %1182 = vmatprep.subr.mxu0 %v1461_v0 }
 0x12c   :  { %1183 = vmatpush3.msra.mxu0 %v1563_v30 }
 0x12d   :  { %1184 = vmatprep.subr.mxu0 %v1461_v0 }
 0x12e   :  { %1185 = vmatpush3.msra.mxu0 %v1568_v32 }
 0x12f   :  { %1224 = vmatprep.subr.mxu0 %v1461_v0 }
 0x1cf   :  { %v306_v43 = vpop.f32.mrf.mxu0 }
 0x1d0   :  { %v307_v44 = vadd.f32 %v306_v43, %v238_v42 }
 0x1d1   :  { %v1118_v45 = vpop.f32.mrf.mxu0 }
 0x1d2   :  { %1373 = vtanh.f32 %v307_v44 }
 0x1df   :  { %v1374_v46 = vpop.eup %1373 }
 0x1e0   :  { %1152 = vmatmul.mubr.f32.vlgmr.msra.gmra.mxu1 %v1374_v46 }
 0x1e1   :  { %1190 = vmatpush3.msra.mxu1 %v1496_v2  ;;  %1221 = vmatprep.mubr.msk.f32.mxu1 %vm1462_vm0, %v1461_v0 }
 0x1e2   :  { %1191 = vmatprep.subr.mxu1 %v1461_v0 }
 0x1e3   :  { %1192 = vmatpush3.msra.mxu1 %v1499_v4 }
 0x1e4   :  { %1193 = vmatprep.subr.mxu1 %v1461_v0 }
 0x1e5   :  { %1194 = vmatpush3.msra.mxu1 %v1503_v6 }
 0x1e6   :  { %1195 = vmatprep.subr.mxu1 %v1461_v0 }
 0x1e7   :  { %1196 = vmatpush3.msra.mxu1 %v1508_v8 }
 0x1e8   :  { %1197 = vmatprep.subr.mxu1 %v1461_v0 }
 0x1e9   :  { %1198 = vmatpush3.msra.mxu1 %v1513_v10 }
 0x1ea   :  { %1199 = vmatprep.subr.mxu1 %v1461_v0 }
 0x1eb   :  { %1200 = vmatpush3.msra.mxu1 %v1518_v12 }
 0x1ec   :  { %1201 = vmatprep.subr.mxu1 %v1461_v0 }
 0x1ed   :  { %1202 = vmatpush3.msra.mxu1 %v1523_v14 }
 0x1ee   :  { %1203 = vmatprep.subr.mxu1 %v1461_v0 }
 0x1ef   :  { %1204 = vmatpush3.msra.mxu1 %v1528_v16 }
 0x1f0   :  { %1205 = vmatprep.subr.mxu1 %v1461_v0 }
 0x1f1   :  { %1206 = vmatpush3.msra.mxu1 %v1533_v18 }
 0x1f2   :  { %1207 = vmatprep.subr.mxu1 %v1461_v0 }
 0x1f3   :  { %1208 = vmatpush3.msra.mxu1 %v1538_v20 }
 0x1f4   :  { %1209 = vmatprep.subr.mxu1 %v1461_v0 }
 0x1f5   :  { %1210 = vmatpush3.msra.mxu1 %v1543_v22 }
 0x1f6   :  { %1211 = vmatprep.subr.mxu1 %v1461_v0 }
 0x1f7   :  { %1212 = vmatpush3.msra.mxu1 %v1548_v24 }
 0x1f8   :  { %1213 = vmatprep.subr.mxu1 %v1461_v0 }
 0x1f9   :  { %1214 = vmatpush3.msra.mxu1 %v1553_v26 }
 0x1fa   :  { %1215 = vmatprep.subr.mxu1 %v1461_v0 }
 0x1fb   :  { %1216 = vmatpush3.msra.mxu1 %v1558_v28 }
 0x1fc   :  { %1217 = vmatprep.subr.mxu1 %v1461_v0 }
 0x1fd   :  { %1218 = vmatpush3.msra.mxu1 %v1563_v30 }
 0x1fe   :  { %1219 = vmatprep.subr.mxu1 %v1461_v0 }
 0x1ff   :  { %1220 = vmatpush3.msra.mxu1 %v1568_v32 }
 0x200   :  { %1259 = vmatprep.subr.mxu1 %v1461_v0 }
 0x2a0   :  { %v379_v48 = vpop.f32.mrf.mxu1 }
 0x2a1   :  { %v380_v49 = vadd.f32 %v379_v48, %v311_v47 }
 0x2a2   :  { %v1153_v50 = vpop.f32.mrf.mxu1 }
 0x2a3   :  { %1375 = vtanh.f32 %v380_v49 }
 0x2b0   :  { %v1376_v51 = vpop.eup %1375 }
 0x2b1   :  { %1187 = vmatmul.mubr.f32.vlgmr.msra.gmra.mxu0 %v1376_v51 }
 0x2b2   :  { %1225 = vmatpush3.msra.mxu0 %v1496_v2  ;;  %1256 = vmatprep.mubr.msk.f32.mxu0 %vm1462_vm0, %v1461_v0 }
 0x2b3   :  { %1226 = vmatprep.subr.mxu0 %v1461_v0 }
 0x2b4   :  { %1227 = vmatpush3.msra.mxu0 %v1499_v4 }
 0x2b5   :  { %1228 = vmatprep.subr.mxu0 %v1461_v0 }
 0x2b6   :  { %1229 = vmatpush3.msra.mxu0 %v1503_v6 }
 0x2b7   :  { %1230 = vmatprep.subr.mxu0 %v1461_v0 }
 0x2b8   :  { %1231 = vmatpush3.msra.mxu0 %v1508_v8 }
 0x2b9   :  { %1232 = vmatprep.subr.mxu0 %v1461_v0 }
 0x2ba   :  { %1233 = vmatpush3.msra.mxu0 %v1513_v10 }
 0x2bb   :  { %1234 = vmatprep.subr.mxu0 %v1461_v0 }
 0x2bc   :  { %1235 = vmatpush3.msra.mxu0 %v1518_v12 }
 0x2bd   :  { %1236 = vmatprep.subr.mxu0 %v1461_v0 }
 0x2be   :  { %1237 = vmatpush3.msra.mxu0 %v1523_v14 }
 0x2bf   :  { %1238 = vmatprep.subr.mxu0 %v1461_v0 }
 0x2c0   :  { %1239 = vmatpush3.msra.mxu0 %v1528_v16 }
 0x2c1   :  { %1240 = vmatprep.subr.mxu0 %v1461_v0 }
 0x2c2   :  { %1241 = vmatpush3.msra.mxu0 %v1533_v18 }
 0x2c3   :  { %1242 = vmatprep.subr.mxu0 %v1461_v0 }
 0x2c4   :  { %1243 = vmatpush3.msra.mxu0 %v1538_v20 }
 0x2c5   :  { %1244 = vmatprep.subr.mxu0 %v1461_v0 }
 0x2c6   :  { %1245 = vmatpush3.msra.mxu0 %v1543_v22 }
 0x2c7   :  { %1246 = vmatprep.subr.mxu0 %v1461_v0 }
 0x2c8   :  { %1247 = vmatpush3.msra.mxu0 %v1548_v24 }
 0x2c9   :  { %1248 = vmatprep.subr.mxu0 %v1461_v0 }
 0x2ca   :  { %1249 = vmatpush3.msra.mxu0 %v1553_v26 }
 0x2cb   :  { %1250 = vmatprep.subr.mxu0 %v1461_v0 }
 0x2cc   :  { %1251 = vmatpush3.msra.mxu0 %v1558_v28 }
 0x2cd   :  { %1252 = vmatprep.subr.mxu0 %v1461_v0 }
 0x2ce   :  { %1253 = vmatpush3.msra.mxu0 %v1563_v30 }
 0x2cf   :  { %1254 = vmatprep.subr.mxu0 %v1461_v0 }
 0x2d0   :  { %1255 = vmatpush3.msra.mxu0 %v1568_v32 }
 0x2d1   :  { %1294 = vmatprep.subr.mxu0 %v1461_v0 }
 0x371   :  { %v452_v53 = vpop.f32.mrf.mxu0 }
 0x372   :  { %v453_v54 = vadd.f32 %v452_v53, %v384_v52 }
 0x373   :  { %v1188_v55 = vpop.f32.mrf.mxu0 }
 0x374   :  { %1377 = vtanh.f32 %v453_v54 }
 0x381   :  { %v1378_v56 = vpop.eup %1377 }
 0x382   :  { %1222 = vmatmul.mubr.f32.vlgmr.msra.gmra.mxu1 %v1378_v56 }
 0x383   :  { %1260 = vmatpush3.msra.mxu1 %v1496_v2  ;;  %1291 = vmatprep.mubr.msk.f32.mxu1 %vm1462_vm0, %v1461_v0 }
 0x384   :  { %1261 = vmatprep.subr.mxu1 %v1461_v0 }
 0x385   :  { %1262 = vmatpush3.msra.mxu1 %v1499_v4 }
 0x386   :  { %1263 = vmatprep.subr.mxu1 %v1461_v0 }
 0x387   :  { %1264 = vmatpush3.msra.mxu1 %v1503_v6 }
 0x388   :  { %1265 = vmatprep.subr.mxu1 %v1461_v0 }
 0x389   :  { %1266 = vmatpush3.msra.mxu1 %v1508_v8 }
 0x38a   :  { %1267 = vmatprep.subr.mxu1 %v1461_v0 }
 0x38b   :  { %1268 = vmatpush3.msra.mxu1 %v1513_v10 }
 0x38c   :  { %1269 = vmatprep.subr.mxu1 %v1461_v0 }
 0x38d   :  { %1270 = vmatpush3.msra.mxu1 %v1518_v12 }
 0x38e   :  { %1271 = vmatprep.subr.mxu1 %v1461_v0 }
 0x38f   :  { %1272 = vmatpush3.msra.mxu1 %v1523_v14 }
 0x390   :  { %1273 = vmatprep.subr.mxu1 %v1461_v0 }
 0x391   :  { %1274 = vmatpush3.msra.mxu1 %v1528_v16 }
 0x392   :  { %1275 = vmatprep.subr.mxu1 %v1461_v0 }
 0x393   :  { %1276 = vmatpush3.msra.mxu1 %v1533_v18 }
 0x394   :  { %1277 = vmatprep.subr.mxu1 %v1461_v0 }
 0x395   :  { %1278 = vmatpush3.msra.mxu1 %v1538_v20 }
 0x396   :  { %1279 = vmatprep.subr.mxu1 %v1461_v0 }
 0x397   :  { %1280 = vmatpush3.msra.mxu1 %v1543_v22 }
 0x398   :  { %1281 = vmatprep.subr.mxu1 %v1461_v0 }
 0x399   :  { %1282 = vmatpush3.msra.mxu1 %v1548_v24 }
 0x39a   :  { %1283 = vmatprep.subr.mxu1 %v1461_v0 }
 0x39b   :  { %1284 = vmatpush3.msra.mxu1 %v1553_v26 }
 0x39c   :  { %1285 = vmatprep.subr.mxu1 %v1461_v0 }
 0x39d   :  { %1286 = vmatpush3.msra.mxu1 %v1558_v28 }
 0x39e   :  { %1287 = vmatprep.subr.mxu1 %v1461_v0 }
 0x39f   :  { %1288 = vmatpush3.msra.mxu1 %v1563_v30 }
 0x3a0   :  { %1289 = vmatprep.subr.mxu1 %v1461_v0 }
 0x3a1   :  { %1290 = vmatpush3.msra.mxu1 %v1568_v32 }
 0x3a2   :  { %1329 = vmatprep.subr.mxu1 %v1461_v0 }
 0x442   :  { %v525_v58 = vpop.f32.mrf.mxu1 }
 0x443   :  { %v526_v59 = vadd.f32 %v525_v58, %v457_v57 }
 0x444   :  { %v1223_v60 = vpop.f32.mrf.mxu1 }
 0x445   :  { %1379 = vtanh.f32 %v526_v59 }
 0x452   :  { %v1380_v61 = vpop.eup %1379 }
 0x453   :  { %1257 = vmatmul.mubr.f32.vlgmr.msra.gmra.mxu0 %v1380_v61 }
 0x454   :  { %1295 = vmatpush3.msra.mxu0 %v1496_v2  ;;  %1326 = vmatprep.mubr.msk.f32.mxu0 %vm1462_vm0, %v1461_v0 }
 0x455   :  { %1296 = vmatprep.subr.mxu0 %v1461_v0 }
 0x456   :  { %1297 = vmatpush3.msra.mxu0 %v1499_v4  ;;  %v88_v4 = vld [vmem:[#allocation5 + $0x178] sm:$0xff] }
 0x457   :  { %1298 = vmatprep.subr.mxu0 %v1461_v0 }
 0x458   :  { %1299 = vmatpush3.msra.mxu0 %v1503_v6  ;;  %v86_v6 = vld [vmem:[#allocation5 + $0x168] sm:$0xff] }
 0x459   :  { %1300 = vmatprep.subr.mxu0 %v1461_v0 }
 0x45a   :  { %1301 = vmatpush3.msra.mxu0 %v1508_v8  ;;  %v84_v8 = vld [vmem:[#allocation5 + $0x158] sm:$0xff] }
 0x45b   :  { %1302 = vmatprep.subr.mxu0 %v1461_v0 }
 0x45c   :  { %1303 = vmatpush3.msra.mxu0 %v1513_v10  ;;  %v82_v10 = vld [vmem:[#allocation5 + $0x148] sm:$0xff] }
 0x45d   :  { %1304 = vmatprep.subr.mxu0 %v1461_v0 }
 0x45e   :  { %1305 = vmatpush3.msra.mxu0 %v1518_v12 }
 0x45f   :  { %1306 = vmatprep.subr.mxu0 %v1461_v0 }
 0x460   :  { %1307 = vmatpush3.msra.mxu0 %v1523_v14 }
 0x461   :  { %1308 = vmatprep.subr.mxu0 %v1461_v0 }
 0x462   :  { %1309 = vmatpush3.msra.mxu0 %v1528_v16  ;;  %v81_v16 = vld [vmem:[#allocation5 + $0x140] sm:$0xff] }
 0x463   :  { %1310 = vmatprep.subr.mxu0 %v1461_v0 }
 0x464   :  { %1311 = vmatpush3.msra.mxu0 %v1533_v18  ;;  %v79_v18 = vld [vmem:[#allocation5 + $0x130] sm:$0xff] }
 0x465   :  { %1312 = vmatprep.subr.mxu0 %v1461_v0 }
 0x466   :  { %1313 = vmatpush3.msra.mxu0 %v1538_v20  ;;  %v77_v20 = vld [vmem:[#allocation5 + $0x120] sm:$0xff] }
 0x467   :  { %1314 = vmatprep.subr.mxu0 %v1461_v0 }
 0x468   :  { %1315 = vmatpush3.msra.mxu0 %v1543_v22  ;;  %v75_v22 = vld [vmem:[#allocation5 + $0x110] sm:$0xff] }
 0x469   :  { %1316 = vmatprep.subr.mxu0 %v1461_v0 }
 0x46a   :  { %1317 = vmatpush3.msra.mxu0 %v1548_v24  ;;  %v73_v24 = vld [vmem:[#allocation5 + $0x100] sm:$0xff] }
 0x46b   :  { %1318 = vmatprep.subr.mxu0 %v1461_v0 }
 0x46c   :  { %1319 = vmatpush3.msra.mxu0 %v1553_v26 }
 0x46d   :  { %1320 = vmatprep.subr.mxu0 %v1461_v0 }
 0x46e   :  { %1321 = vmatpush3.msra.mxu0 %v1558_v28 }
 0x46f   :  { %1322 = vmatprep.subr.mxu0 %v1461_v0 }
 0x470   :  { %1323 = vmatpush3.msra.mxu0 %v1563_v30  ;;  %v90_v30 = vld [vmem:[%s1852_s2 + $0x1] sm:$0x1] }
 0x471   :  { %1324 = vmatprep.subr.mxu0 %v1461_v0 }
 0x472   :  { %1325 = vmatpush3.msra.mxu0 %v1568_v32 }
 0x513   :  { %v598_v63 = vpop.f32.mrf.mxu0 }
 0x514   :  { %v599_v1 = vadd.f32 %v598_v63, %v530_v62 }
 0x515   :  { %v1258_v2 = vpop.f32.mrf.mxu0 }
 0x516   :  { %1381 = vtanh.f32 %v599_v1 }
 0x523   :  { %v1382_v3 = vpop.eup %1381 }
 0x524   :  { %1292 = vmatmul.mubr.f32.vlgmr.msra.gmra.mxu1 %v1382_v3 }
 0x525   :  { %1361 = vmatprep.mubr.msk.f32.mxu1 %vm1462_vm0, %v1461_v0  ;;  %1330 = vmatpush3.msra.mxu1 %v88_v4 }
 0x526   :  { %1331 = vmatprep.subr.mxu1 %v1461_v0 }
 0x527   :  { %1332 = vmatpush3.msra.mxu1 %v87_v5 }
 0x528   :  { %1333 = vmatprep.subr.mxu1 %v1461_v0 }
 0x529   :  { %1334 = vmatpush3.msra.mxu1 %v86_v6 }
 0x52a   :  { %1335 = vmatprep.subr.mxu1 %v1461_v0 }
 0x52b   :  { %1336 = vmatpush3.msra.mxu1 %v85_v7 }
 0x52c   :  { %1337 = vmatprep.subr.mxu1 %v1461_v0 }
 0x52d   :  { %1338 = vmatpush3.msra.mxu1 %v84_v8 }
 0x52e   :  { %1339 = vmatprep.subr.mxu1 %v1461_v0 }
 0x52f   :  { %1340 = vmatpush3.msra.mxu1 %v83_v9 }
 0x530   :  { %1341 = vmatprep.subr.mxu1 %v1461_v0 }
 0x531   :  { %1342 = vmatpush3.msra.mxu1 %v82_v10 }
 0x532   :  { %1343 = vmatprep.subr.mxu1 %v1461_v0 }
 0x533   :  { %1344 = vmatpush3.msra.mxu1 %v81_v16 }
 0x534   :  { %1345 = vmatprep.subr.mxu1 %v1461_v0 }
 0x535   :  { %1346 = vmatpush3.msra.mxu1 %v80_v17 }
 0x536   :  { %1347 = vmatprep.subr.mxu1 %v1461_v0 }
 0x537   :  { %1348 = vmatpush3.msra.mxu1 %v79_v18 }
 0x538   :  { %1349 = vmatprep.subr.mxu1 %v1461_v0 }
 0x539   :  { %1350 = vmatpush3.msra.mxu1 %v78_v19 }
 0x53a   :  { %1351 = vmatprep.subr.mxu1 %v1461_v0 }
 0x53b   :  { %1352 = vmatpush3.msra.mxu1 %v77_v20 }
 0x53c   :  { %1353 = vmatprep.subr.mxu1 %v1461_v0 }
 0x53d   :  { %1354 = vmatpush3.msra.mxu1 %v76_v21 }
 0x53e   :  { %1355 = vmatprep.subr.mxu1 %v1461_v0 }
 0x53f   :  { %1356 = vmatpush3.msra.mxu1 %v75_v22 }
 0x540   :  { %1357 = vmatprep.subr.mxu1 %v1461_v0 }
 0x541   :  { %1358 = vmatpush3.msra.mxu1 %v74_v23 }
 0x542   :  { %1359 = vmatprep.subr.mxu1 %v1461_v0 }
 0x543   :  { %1360 = vmatpush3.msra.mxu1 %v73_v24 }
 0x5e4   :  { %v671_v12 = vpop.f32.mrf.mxu1 }
 0x5e5   :  { %v672_v13 = vadd.f32 %v671_v12, %v603_v11 }
 0x5e6   :  { %v1293_v14 = vpop.f32.mrf.mxu1 }
 0x5e7   :  { %1383 = vtanh.f32 %v672_v13 }
 0x5f4   :  { %v1384_v15 = vpop.eup %1383 }
 0x5f5   :  { %1327 = vmatmul.mubr.f32.vlgmr.msra.gmra.mxu0 %v1384_v15 }
 0x6b5   :  { %v744_v26 = vpop.f32.mrf.mxu0 }
 0x6b6   :  { %v745_v27 = vadd.f32 %v744_v26, %v676_v25 }
 0x6b7   :  { %v1328_v28 = vpop.f32.mrf.mxu0 }
 0x6b8   :  { %1385 = vtanh.f32 %v745_v27 }
 0x6c5   :  { %v1386_v29 = vpop.eup %1385 }
 0x6c6   :  { %1362 = vmatmul.mubr.f32.vlgmr.msra.gmra.mxu1 %v1386_v29 }
 0x786   :  { %v815_v31 = vpop.f32.mrf.mxu1 }
 0x787   :  { %v816_v32 = vadd.f32 %v815_v31, %v90_v30 }
 0x788   :  { %v1363_v33 = vpop.f32.mrf.mxu1 }
 0x789   :  { %v843_v34 = vmul.f32 -1.442695, %v816_v32 }
 0x78b   :  { %1387 = vpow2.f32 %v843_v34 }
 0x798   :  { %v1388_v35 = vpop.eup %1387 }
 0x799   :  { %v822_v0 = vadd.f32 1.0, %v1388_v35 }
 0x79b   :  { %1389 = vrcp.f32 %v822_v0 }
 0x7a8   :  { %v1390_v36 = vpop.eup %1389 }
 0x7a9   :  { %825 = vst [vmem:[#allocation7] sm:$0x1] %v1390_v36 }
 0x7aa   :  { %1442 = shalt.err (!%p1439_p0)
}
 0x7ab   :  { %835 = dma.vmem_to_hbm [thread:$0]  %s833_s27, 16, %s1853_s3, [#allocation4]  }
 0x7ac   :  { %1455 = dma.done.wait [#allocation4], 16  }
 0x7ad   :  { %1456 = vsyncadd [#allocation4], 4294967280 }
 0x7ae   :  { %839 = vsyncpa [#allocation3], 1 }
 0x7af   :  { %840 = vsyncpa [#allocation6], 1 }
 0x7b0   :  { %841 = vsyncpa [#allocation4], 1 }

</bundles_post_ra>
